<compile_context>
chip_gen: v6e
topology: v6e:2x2x1
jax: 0.10.0
libtpu: 0.0.40
codegen_flags: <defaults>
</compile_context>

<pallas_src>
import jax
import jax.numpy as jnp
from jax.experimental import pallas as pl
from jax.experimental.pallas import tpu as pltpu

INPUT_DIM = 1
HIDDEN_DIM = 20
OUTPUT_DIM = 7
NUM_HIDDEN = 1  # the PINN default: exactly one hidden Linear layer


def pinn_forward_kernel(t_ref, w1_ref, b1_ref, w2_ref, b2_ref, w3_ref, b3_ref,
                        o_ref):
    # t_ref: (1, B) batch on lanes; weights (out, in); biases (out, 1).
    x = t_ref[...]                                            # (1, B)

    # Layer 1: K=1 contraction == outer product -> do it on the VPU,
    # no MXU push/pop for degenerate matmul work.
    h = jnp.tanh(w1_ref[...] * x + b1_ref[...])               # (20, B)

    # Layer 2: 20x20 matmul, batch stays lane-dense.
    h = jnp.tanh(
        jnp.dot(w2_ref[...], h, preferred_element_type=jnp.float32)
        + b2_ref[...])                                        # (20, B)

    # Layer 3: 7x20 matmul, output (7, B) written with lane-dense stores.
    y = (jnp.dot(w3_ref[...], h, preferred_element_type=jnp.float32)
         + b3_ref[...])                                       # (7, B)
    o_ref[...] = y.astype(o_ref.dtype)


def pinn_forward(t, params, *, batch_tile=None, max_batch_tile=4096):
    """t: (N, 1) float32.  Returns (N, 7) float32."""
    w1, b1, w2, b2, w3, b3 = params
    n = t.shape[0]

    if batch_tile is None:
        # Lane-dense tile (multiple of 128); aim for >=2 grid steps so v7x's
        # two TensorCores both get work, cap the tile so live activations
        # stay small.
        half = pl.cdiv(n, 2)
        batch_tile = min(max_batch_tile, max(128, 128 * pl.cdiv(half, 128)))
    assert batch_tile % 128 == 0, "batch_tile must be a multiple of 128"

    n_pad = batch_tile * pl.cdiv(n, batch_tile)
    grid = (n_pad // batch_tile,)

    # Batch on the lane axis: (1, n_pad), zero-padded for the ragged tail.
    t_lane = jnp.pad(t.reshape(1, n), ((0, 0), (0, n_pad - n)))

    # Parameters are tiny: every grid step gets the full (out, in) block.
    full = lambda a: pl.BlockSpec(a.shape, lambda i: (0, 0))

    out_lane = pl.pallas_call(
        pinn_forward_kernel,
        out_shape=jax.ShapeDtypeStruct((OUTPUT_DIM, n_pad), jnp.float32),
        grid=grid,
        in_specs=[
            pl.BlockSpec((1, batch_tile), lambda i: (0, i)),   # t (1, B)
            full(w1),                                          # (20, 1)
            full(b1),                                          # (20, 1)
            full(w2),                                          # (20, 20)
            full(b2),                                          # (20, 1)
            full(w3),                                          # (7, 20)
            full(b3),                                          # (7, 1)
        ],
        out_specs=pl.BlockSpec((OUTPUT_DIM, batch_tile), lambda i: (0, i)),
        compiler_params=pltpu.CompilerParams(
            dimension_semantics=("parallel",)),
    )(t_lane, w1, b1, w2, b2, w3, b3)

    # Back to the PyTorch (N, 7) layout; drop the padded tail.
    return out_lane[:, :n].T


def xavier_uniform(key, fan_out, fan_in):
    # matches torch.nn.init.xavier_uniform_ (gain = 1) on a (out, in) weight
    bound = jnp.sqrt(6.0 / (fan_in + fan_out))
    return jax.random.uniform(key, (fan_out, fan_in), jnp.float32,
                              minval=-bound, maxval=bound)


def init_params(key):
    k1, k2, k3 = jax.random.split(key, 3)
    w1 = xavier_uniform(k1, HIDDEN_DIM, INPUT_DIM)     # (20, 1)
    b1 = jnp.zeros((HIDDEN_DIM, 1), jnp.float32)
    w2 = xavier_uniform(k2, HIDDEN_DIM, HIDDEN_DIM)    # (20, 20)
    b2 = jnp.zeros((HIDDEN_DIM, 1), jnp.float32)
    w3 = xavier_uniform(k3, OUTPUT_DIM, HIDDEN_DIM)    # (7, 20)
    b3 = jnp.zeros((OUTPUT_DIM, 1), jnp.float32)
    return (w1, b1, w2, b2, w3, b3)


def pinn_forward_ref(t, params):
    w1, b1, w2, b2, w3, b3 = params
    # layer 1 is a K=1 contraction == broadcast multiply (exact in f32)
    u = jnp.tanh(t * w1.T + b1.T)
    u = jnp.tanh(u @ w2.T + b2.T)
    return u @ w3.T + b3.T


if __name__ == "__main__":
    key = jax.random.PRNGKey(0)
    kp, kt = jax.random.split(key)
    params = init_params(kp)

    # Ragged batch on purpose: exercises padding + a 2-step parallel grid.
    N = 200
    t = jax.random.uniform(kt, (N, INPUT_DIM), jnp.float32)

    out = jax.block_until_ready(pinn_forward(t, params))

    ref = pinn_forward_ref(t, params)
    assert out.shape == (N, OUTPUT_DIM)
    assert jnp.allclose(out, ref, atol=1e-4, rtol=1e-4), "mismatch vs reference"

    # TODO(synk): PINN.MVP / loss need autograd of the forward w.r.t. t
    # (torch.autograd.grad); on the JAX side that is jax.grad over a pure-JAX
    # forward, not re-implemented inside the Pallas kernel.
    print("KERNEL_OK")
</pallas_src>

<mosaic_0001>
module attributes {stable_mosaic.version = 11 : i64} {
  func.func @pinn_forward_kernel(%arg0: i32, %arg1: memref<1x128xf32, #tpu.memory_space<vmem>>, %arg2: memref<20x1xf32, #tpu.memory_space<vmem>>, %arg3: memref<20x1xf32, #tpu.memory_space<vmem>>, %arg4: memref<20x20xf32, #tpu.memory_space<vmem>>, %arg5: memref<20x1xf32, #tpu.memory_space<vmem>>, %arg6: memref<7x20xf32, #tpu.memory_space<vmem>>, %arg7: memref<7x1xf32, #tpu.memory_space<vmem>>, %arg8: memref<7x128xf32, #tpu.memory_space<vmem>>) attributes {dimension_semantics = [#tpu.dimension_semantics<parallel>], iteration_bounds = array<i64: 2>, scalar_prefetch = 0 : i64, scratch_operands = 0 : i64, tpu.core_type = #tpu.core_type<tc>, window_params = [{transform_indices = @transform_0, window_bounds = array<i64: 1, 128>}, {pipeline_mode = #tpu.pipeline_mode<synchronous>, transform_indices = @transform_1, window_bounds = array<i64: 20, 1>}, {pipeline_mode = #tpu.pipeline_mode<synchronous>, transform_indices = @transform_2, window_bounds = array<i64: 20, 1>}, {pipeline_mode = #tpu.pipeline_mode<synchronous>, transform_indices = @transform_3, window_bounds = array<i64: 20, 20>}, {pipeline_mode = #tpu.pipeline_mode<synchronous>, transform_indices = @transform_4, window_bounds = array<i64: 20, 1>}, {pipeline_mode = #tpu.pipeline_mode<synchronous>, transform_indices = @transform_5, window_bounds = array<i64: 7, 20>}, {pipeline_mode = #tpu.pipeline_mode<synchronous>, transform_indices = @transform_6, window_bounds = array<i64: 7, 1>}, {transform_indices = @transform_7, window_bounds = array<i64: 7, 128>}]} {
    %c0 = arith.constant 0 : index
    %c0_0 = arith.constant 0 : index
    %0 = vector.load %arg1[%c0, %c0_0] : memref<1x128xf32, #tpu.memory_space<vmem>>, vector<1x128xf32>
    %c0_1 = arith.constant 0 : index
    %c0_2 = arith.constant 0 : index
    %1 = vector.load %arg2[%c0_1, %c0_2] : memref<20x1xf32, #tpu.memory_space<vmem>>, vector<20x1xf32>
    %2 = vector.broadcast %1 : vector<20x1xf32> to vector<20x128xf32>
    %3 = vector.broadcast %0 : vector<1x128xf32> to vector<20x128xf32>
    %4 = arith.mulf %2, %3 : vector<20x128xf32>
    %c0_3 = arith.constant 0 : index
    %c0_4 = arith.constant 0 : index
    %5 = vector.load %arg3[%c0_3, %c0_4] : memref<20x1xf32, #tpu.memory_space<vmem>>, vector<20x1xf32>
    %6 = vector.broadcast %5 : vector<20x1xf32> to vector<20x128xf32>
    %7 = arith.addf %4, %6 : vector<20x128xf32>
    %8 = math.tanh %7 : vector<20x128xf32>
    %c0_5 = arith.constant 0 : index
    %c0_6 = arith.constant 0 : index
    %9 = vector.load %arg4[%c0_5, %c0_6] : memref<20x20xf32, #tpu.memory_space<vmem>>, vector<20x20xf32>
    %cst = arith.constant dense<0.000000e+00> : vector<20x128xf32>
    %10 = tpu.matmul %9, %8, %cst {dimension_numbers = #tpu.dot_dimension_numbers<[1], [0], [0], [1], [0, 0, 1, 1], [], []>} : vector<20x20xf32>, vector<20x128xf32>, vector<20x128xf32> -> vector<20x128xf32>
    %c0_7 = arith.constant 0 : index
    %c0_8 = arith.constant 0 : index
    %11 = vector.load %arg5[%c0_7, %c0_8] : memref<20x1xf32, #tpu.memory_space<vmem>>, vector<20x1xf32>
    %12 = vector.broadcast %11 : vector<20x1xf32> to vector<20x128xf32>
    %13 = arith.addf %10, %12 : vector<20x128xf32>
    %14 = math.tanh %13 : vector<20x128xf32>
    %c0_9 = arith.constant 0 : index
    %c0_10 = arith.constant 0 : index
    %15 = vector.load %arg6[%c0_9, %c0_10] : memref<7x20xf32, #tpu.memory_space<vmem>>, vector<7x20xf32>
    %cst_11 = arith.constant dense<0.000000e+00> : vector<7x128xf32>
    %16 = tpu.matmul %15, %14, %cst_11 {dimension_numbers = #tpu.dot_dimension_numbers<[1], [0], [0], [1], [0, 0, 1, 1], [], []>} : vector<7x20xf32>, vector<20x128xf32>, vector<7x128xf32> -> vector<7x128xf32>
    %c0_12 = arith.constant 0 : index
    %c0_13 = arith.constant 0 : index
    %17 = vector.load %arg7[%c0_12, %c0_13] : memref<7x1xf32, #tpu.memory_space<vmem>>, vector<7x1xf32>
    %18 = vector.broadcast %17 : vector<7x1xf32> to vector<7x128xf32>
    %19 = arith.addf %16, %18 : vector<7x128xf32>
    %c0_14 = arith.constant 0 : index
    %c0_15 = arith.constant 0 : index
    %20 = vector.load %arg8[%c0_14, %c0_15] : memref<7x128xf32, #tpu.memory_space<vmem>>, vector<7x128xf32>
    tpu.vector_store %arg8[%c0_14, %c0_15], %19 {strides = array<i32>} : memref<7x128xf32, #tpu.memory_space<vmem>>, vector<7x128xf32>,
    return
  }
  func.func @transform_0(%arg0: i32) -> (i32, i32) {
    %c0_i32 = arith.constant 0 : i32
    %c0_i32_0 = arith.constant 0 : i32
    return %c0_i32, %arg0 : i32, i32
  }
  func.func @transform_1(%arg0: i32) -> (i32, i32) {
    %c0_i32 = arith.constant 0 : i32
    %c0_i32_0 = arith.constant 0 : i32
    %c0_i32_1 = arith.constant 0 : i32
    return %c0_i32, %c0_i32_0 : i32, i32
  }
  func.func @transform_2(%arg0: i32) -> (i32, i32) {
    %c0_i32 = arith.constant 0 : i32
    %c0_i32_0 = arith.constant 0 : i32
    %c0_i32_1 = arith.constant 0 : i32
    return %c0_i32, %c0_i32_0 : i32, i32
  }
  func.func @transform_3(%arg0: i32) -> (i32, i32) {
    %c0_i32 = arith.constant 0 : i32
    %c0_i32_0 = arith.constant 0 : i32
    %c0_i32_1 = arith.constant 0 : i32
    return %c0_i32, %c0_i32_0 : i32, i32
  }
  func.func @transform_4(%arg0: i32) -> (i32, i32) {
    %c0_i32 = arith.constant 0 : i32
    %c0_i32_0 = arith.constant 0 : i32
    %c0_i32_1 = arith.constant 0 : i32
    return %c0_i32, %c0_i32_0 : i32, i32
  }
  func.func @transform_5(%arg0: i32) -> (i32, i32) {
    %c0_i32 = arith.constant 0 : i32
    %c0_i32_0 = arith.constant 0 : i32
    %c0_i32_1 = arith.constant 0 : i32
    return %c0_i32, %c0_i32_0 : i32, i32
  }
  func.func @transform_6(%arg0: i32) -> (i32, i32) {
    %c0_i32 = arith.constant 0 : i32
    %c0_i32_0 = arith.constant 0 : i32
    %c0_i32_1 = arith.constant 0 : i32
    return %c0_i32, %c0_i32_0 : i32, i32
  }
  func.func @transform_7(%arg0: i32) -> (i32, i32) {
    %c0_i32 = arith.constant 0 : i32
    %c0_i32_0 = arith.constant 0 : i32
    return %c0_i32, %arg0 : i32, i32
  }
}

</mosaic_0001>

<bundles_post_ra>
// kernel: tpu_custom_call.1
= control target key start
LH: loop header
LB: loop body
LE: loop exit
PB: predicated region body
PF: predicated region fallthrough
CT: control target
= control target key end

     0   :  { %12 = vsyncpa [#allocation3], 0  ;;  %s962_s0 = inlined_call_operand.vmem [shape: f32[1,256], index: 0, kind: input, shape index: {}]   ;;  %s963_s1 = inlined_call_operand.vmem [shape: f32[20,1], index: 1, kind: input, shape index: {}]   ;;  %s964_s2 = inlined_call_operand.vmem [shape: f32[20,1], index: 2, kind: input, shape index: {}]   ;;  %s965_s3 = inlined_call_operand.vmem [shape: f32[20,20], index: 3, kind: input, shape index: {}]   ;;  %s966_s4 = inlined_call_operand.vmem [shape: f32[20,1], index: 4, kind: input, shape index: {}]   ;;  %s967_s5 = inlined_call_operand.vmem [shape: f32[7,20], index: 5, kind: input, shape index: {}]   ;;  %s968_s6 = inlined_call_operand.vmem [shape: f32[7,1], index: 6, kind: input, shape index: {}]   ;;  %s969_s7 = inlined_call_operand.hbm [shape: f32[7,256], index: 7, kind: output, shape index: {}]  }
   0x1   :  { %14 = vsyncpa [#allocation3 + $0x1], 0  ;;  %s807_s24 = smov 0   ;;  %s809_s25 = smov 0  }
   0x2   :  { %s811_s26 = smov 0   ;;  %s813_s27 = smov 0  }
   0x3 LB: > { %s828_s28 = sadd.s32 4294967295, %s761_s27   ;;  %s595_s29 = sadd.s32 4294967294, %s761_s27   ;;  %s761_s27 = sphi %s813_s27, %s975_s27   ;;  %s757_s26 = sphi %s811_s26, %s974_s26   ;;  %s753_s25 = sphi %s809_s25, %s973_s25   ;;  %s749_s24 = sphi %s807_s24, %s972_s24  }
   0x4   : > { %s832_s30 = sadd.s32 1, %s761_s27   ;;  %s179_s8 = sadd.s32 1, %s757_s26 }
   0x5   : > { %s176_s9 = ssub.s32 %s761_s27, %s832_s30  ;;  %p189_p0 = scmp.ne.s32.totalorder %s757_s26, %s753_s25 }
   0x6   : > { %p177_p1 = scmp.eq.s32.totalorder %s176_s9, 0  ;;  %p190_p2 = scmp.eq.s32.totalorder %s828_s28, 1 }
   0x7   : > { %p195_p3 = scmp.ne.s32.totalorder %s753_s25, %s749_s24  ;;  %p196_p4 = scmp.eq.s32.totalorder %s595_s29, 1 }
   0x8   : > { %s843_s10 = scalar_select %p177_p1, %s757_s26, %s179_s8  }
   0x9   : > { %p845_p5 = por %p190_p2, %p189_p0  ;;  %p849_p6 = por %p196_p4, %p195_p3 }
   0xa   : > { %p598_p7 = scmp.ge.s32.totalorder %s761_s27, 1  ;;  %p238_p8 = scmp.lt.s32.totalorder %s761_s27, 3 }
   0xc   : > { %p239_p9 = pnand %p598_p7, %p238_p8 }
   0xd   : > { %p268_p10 = scmp.lt.s32.totalorder (!%p239_p9), %s828_s28, 1  ;;  %s265_s17 = sand.u32 (!%p239_p9), 1, %s753_s25  }
   0xe   : > { %242 = sbr.rel (%p239_p9) target bundleno = 602 (0x25a), region = 48  ;;  %s599_s18 = sshll.u32 (!%p239_p9), %s265_s17, 3 }
   0xf   : > { %s267_s20 = scalar_lea.vmem (!%p239_p9), [#allocation2], %s599_s18  ;;  %s526_s8 = scalar_lea.sflag (!%p239_p9), [#allocation3], %s265_s17 }
  0x10   : > { %s539_s21 = sshll.u32 (!%p239_p9), %s267_s20, 4  ;;  %s540_s21 = int_to_ptr.vmem [resolvable:$true] %s539_s21 }
  0x11   : > { %s701_s9 = scalar_lea.vmem (!%p239_p9), %s540_s21, 128 }
  0x12   : > { %p702_p11 = scmp.ne.s32.totalorder (!%p239_p9), %s540_s21, %s701_s9 }
  0x13   : > { %v301_v0 = vld [vmem:[%s964_s2 + $0x10] sm:$0xf]  ;;  %v763_v2 = vmov 0   ;;  %v273_v3 = vld [vmem:[%s963_s1 + $0x8] sm:$0xff]  ;;  %v272_v4 = vld [vmem:[%s963_s1] sm:$0xff]  ;;  %v764_v11 = vmov 0.0  }
  0x14   : > { %v274_v1 = vld [vmem:[%s963_s1 + $0x10] sm:$0xf]  ;;  %688 = vset.pattern.permute.xlu1 %v763_v2  ;;  %687 = vset.pattern.permute.xlu0 %v763_v2  ;;  %v300_v5 = vld [vmem:[%s964_s2 + $0x8] sm:$0xff]  ;;  %v299_v6 = vld [vmem:[%s964_s2] sm:$0xff]  ;;  %vm765_vm0 = vmmov 0   ;;  %s269_s19 = scalar_select %p268_p10, %s828_s28, 1 }
  0x15   : > { %314 = vperm.xlu1 %688, %v301_v0   ;;  %287 = vperm.xlu0 %687, %v274_v1   ;;  %v328_v7 = vld [vmem:[%s966_s4 + $0x10] sm:$0xf]  ;;  %v327_v8 = vld [vmem:[%s966_s4 + $0x8] sm:$0xff]  ;;  %v326_v9 = vld [vmem:[%s966_s4] sm:$0xff]  ;;  %vm354_vm1 = vcmask 1043456   ;;  %vm344_vm2 = vcmask 162816   ;;  %p703_p12 = pnand %p702_p11, %p845_p5 }
  0x16   : > { %v442_v10 = vld [vmem:[%s968_s6] sm:$0x7f]  ;;  %621 = vmatprep.subr.mxu0 %v764_v11  ;;  %636 = vmatprep.subr.mxu1 %v764_v11  ;;  %s270_s22 = scalar_lea.vmem %s962_s0, %s269_s19  ;;  %v324_v29 = vld [vmem:[%s965_s3 + $0x8] sm:$0xff]  ;;  %v325_v30 = vld [vmem:[%s965_s3 + $0x10] sm:$0xf]  ;;  %s608_s19 = sshll.u32 %s828_s28, 7 }
  0x17   : > { %627 = vmatprep.mubr.msk.f32.mxu0 %vm765_vm0, %v764_v11  ;;  %642 = vmatprep.mubr.msk.f32.mxu1 %vm765_vm0, %v764_v11  ;;  %v600_v12 = vld [vmem:[%s270_s22] ss:$0 sm:$0xff]  ;;  %s927_s29 = scalar_lea.hbm %s969_s7, %s608_s19  ;;  %p704_p13 = pneg %p703_p12 }
  0x18   : > { %v323_v27 = vld [vmem:[%s965_s3] sm:$0xff]  ;;  %s766_s28 = smov [#allocation2]  }
  0x19   : > { %282 = vperm.xlu0 %687, %v273_v3   ;;  %277 = vperm.xlu1 %688, %v272_v4   ;;  %v441_v45 = vld [vmem:[%s967_s5] sm:$0x7f]  ;;  %s705_s13 = sshll.u32 %s766_s28, 4  ;;  %s706_s13 = int_to_ptr.vmem [resolvable:$false] %s705_s13 }
  0x1a   : > { %s707_s14 = scalar_lea.vmem %s706_s13, 256  ;;  %p708_p0 = scmp.lt.s32.totalorder %s540_s21, %s706_s13 }
  0x1b   : > { %p709_p1 = scmp.lt.s32.totalorder %s707_s14, %s701_s9 }
  0x1d   : > { %309 = vperm.xlu0 %687, %v300_v5   ;;  %304 = vperm.xlu1 %688, %v299_v6   ;;  %p710_p2 = por %p709_p1, %p708_p0 }
  0x1f   : > { %p711_p3 = pnand %p710_p2, %p704_p13 }
  0x21   : > { %341 = vperm.xlu0 %687, %v328_v7   ;;  %336 = vperm.xlu1 %688, %v327_v8  }
  0x25   : > { %331 = vperm.xlu0 %687, %v326_v9   ;;  %445 = vperm.xlu1 %688, %v442_v10  }
  0x90   : > { %v315_v13 = vpop.permute.xlu1 %314  ;;  %v288_v14 = vpop.permute.xlu0 %287 }
  0x91   : > { %v298_v15 = vmul.f32 %v600_v12, %v288_v14 }
  0x93   : > { %v319_v16 = vadd.f32 %v315_v13, %v298_v15 }
  0x94   : > { %v283_v17 = vpop.permute.xlu0 %282  ;;  %v278_v18 = vpop.permute.xlu1 %277 }
  0x95   : > { %689 = vtanh.f32 %v319_v16  ;;  %v297_v19 = vmul.f32 %v600_v12, %v283_v17  ;;  %v296_v20 = vmul.f32 %v600_v12, %v278_v18 }
  0x98   : > { %v310_v21 = vpop.permute.xlu0 %309  ;;  %v305_v22 = vpop.permute.xlu1 %304 }
  0x99   : > { %v318_v23 = vadd.f32 %v310_v21, %v297_v19  ;;  %v317_v24 = vadd.f32 %v305_v22, %v296_v20 }
  0x9b   : > { %691 = vtanh.f32 %v318_v23 }
  0x9c   : > { %693 = vtanh.f32 %v317_v24  ;;  %v342_v33 = vpop.permute.xlu0 %341  ;;  %v337_v36 = vpop.permute.xlu1 %336 }
  0xa0   : > { %v332_v40 = vpop.permute.xlu0 %331  ;;  %v446_v47 = vpop.permute.xlu1 %445 }
  0xa2   : > { %v690_v25 = vpop.eup %689 }
  0xa3   : > { %622 = vmatpush3.msk.msra.mxu0 %vm354_vm1, %v690_v25 }
  0xa4   : > { %623 = vmatprep.subr.mxu0 %v764_v11 }
  0xa8   : > { %v692_v26 = vpop.eup %691 }
  0xa9   : > { %624 = vmatpush3.msra.mxu0 %v692_v26  ;;  %v694_v28 = vpop.eup %693 }
  0xaa   : > { %625 = vmatprep.subr.mxu0 %v764_v11 }
  0xab   : > { %626 = vmatpush3.msra.mxu0 %v694_v28 }
  0xac   : > { %628 = vmatmul.mubr.msk.f32.vlgmr.msra.gmra.mxu0 %vm344_vm2, %v323_v27 }
  0xad   : > { %630 = vmatprep.mubr.msk.f32.mxu0 %vm765_vm0, %v764_v11 }
  0xb0   : > { %631 = vmatmul.mubr.msk.f32.gmra.mxu0 %vm344_vm2, %v324_v29 }
  0xb1   : > { %633 = vmatprep.mubr.msk.f32.mxu0 %vm765_vm0, %v764_v11 }
  0xb4   : > { %634 = vmatmul.mubr.msk.f32.gmra.mxu0 %vm344_vm2, %v325_v30 }
 0x16c   : > { %v424_v31 = vpop.f32.mrf.mxu0 }
 0x16d   : > { %v425_v42 = vadd.f32 %v424_v31, %v332_v40 }
 0x16e   : > { %v629_v32 = vpop.f32.mrf.mxu0 }
 0x170   : > { %v429_v34 = vpop.f32.mrf.mxu0 }
 0x171   : > { %v430_v38 = vadd.f32 %v429_v34, %v337_v36 }
 0x172   : > { %v632_v35 = vpop.f32.mrf.mxu0 }
 0x174   : > { %v434_v37 = vpop.f32.mrf.mxu0 }
 0x175   : > { %v435_v39 = vadd.f32 %v434_v37, %v342_v33 }
 0x176   : > { %v635_v41 = vpop.f32.mrf.mxu0 }
 0x177   : > { %695 = vtanh.f32 %v435_v39 }
 0x178   : > { %697 = vtanh.f32 %v430_v38 }
 0x179   : > { %699 = vtanh.f32 %v425_v42 }
 0x184   : > { %v696_v43 = vpop.eup %695 }
 0x185   : > { %637 = vmatpush3.msk.msra.mxu1 %vm354_vm1, %v696_v43  ;;  %v698_v44 = vpop.eup %697 }
 0x186   : > { %638 = vmatprep.subr.mxu1 %v764_v11  ;;  %v700_v46 = vpop.eup %699 }
 0x187   : > { %639 = vmatpush3.msra.mxu1 %v698_v44 }
 0x188   : > { %640 = vmatprep.subr.mxu1 %v764_v11 }
 0x189   : > { %641 = vmatpush3.msra.mxu1 %v700_v46 }
 0x18a   : > { %643 = vmatmul.mubr.msk.f32.vlgmr.msra.gmra.mxu1 %vm344_vm2, %v441_v45 }
 0x24a   : > { %v520_v48 = vpop.f32.mrf.mxu1 }
 0x24b   : > { %v521_v49 = vadd.f32 %v520_v48, %v446_v47 }
 0x24c   : > { %v644_v50 = vpop.f32.mrf.mxu1 }
 0x24d   : > { %524 = vst [vmem:[%s267_s20] sm:$0x7f] %v521_v49 }
 0x24e   : > { %714 = shalt.err (!%p711_p3)
}
 0x24f   : > { %s715_s15 = scalar_lea.hbm %s927_s29, 128  ;;  %s719_s18 = scalar_lea.hbm %s969_s7, 256 }
 0x250   : > { %p716_p4 = scmp.ne.s32.totalorder %s927_s29, %s715_s15  ;;  %p720_p9 = scmp.lt.s32.totalorder %s927_s29, %s969_s7 }
 0x251   : > { %p721_p10 = scmp.lt.s32.totalorder %s719_s18, %s715_s15 }
 0x252   : > { %p717_p7 = pnand %p716_p4, %p845_p5 }
 0x253   : > { %p722_p11 = por %p721_p10, %p720_p9 }
 0x254   : > { %p718_p8 = pneg %p717_p7 }
 0x256   : > { %p723_p12 = pnand %p722_p11, %p718_p8 }
 0x258   : > { %726 = shalt.err (!%p723_p12)
}
 0x259   : > { %645 = dma.vmem_to_hbm [thread:$0]  (%p845_p5), %s540_s21, 128, %s927_s29, %s526_s8  }
 0x25a PF: > { %p651_p13 = scmp.ge.s32.totalorder %s761_s27, 2  ;;  %s551_s22 = sand.u32 1, %s749_s24  }
 0x25b   : > { %s552_s23 = scalar_lea.sflag [#allocation3], %s551_s22 }
 0x25c   : > { %p648_p0 = pnand %p651_p13, %p849_p6 }
 0x25e   : > { %p649_p1 = pneg %p648_p0 }
 0x260   : > { %744 = dma.done.wait (%p649_p1), %s552_s23, 128  }
 0x261   : > { %746 = vsyncadd (%p649_p1), %s552_s23, 4294967168  ;;  %p17_p2 = scmp.ge.s32.totalorder %s832_s30, 4   ;;  %s972_s24 = smov %s753_s25 }
 0x262   : > { %s973_s25 = smov %s757_s26  ;;  %s974_s26 = smov %s843_s10 }
 0x263   : > { %s975_s27 = smov %s832_s30  ;;  %19 = sbr.rel (!%p17_p2) target bundleno = 3 (0x3), region = 83 }
 0x268   :  { %557 = vsyncpa [#allocation3], 1 }
 0x269   :  { %559 = vsyncpa [#allocation3 + $0x1], 1 }

</bundles_post_ra>
